<compile_context>
chip_gen: v6e
topology: v6e:2x2x1
jax: 0.10.0
libtpu: 0.0.40
codegen_flags: <defaults>
</compile_context>

<pallas_src>
from typing import Optional, Sequence, Union
import math

import numpy as np

import jax
import jax.numpy as jnp
from jax import lax
from jax.experimental import pallas as pl
from jax.experimental.pallas import tpu as pltpu

_LANE = 128
_XLA_FALLBACK_BYTES = 256 * 1024      # auto mode: tiny tensors stay in XLA
_MIN_MULTISTEP_BYTES = 1 << 20        # only force >=2 grid steps above ~1 MiB


# ----------------------------------------------------------------------------
# Small helpers
# ----------------------------------------------------------------------------
def _round_up(a: int, b: int) -> int:
    return ((a + b - 1) // b) * b


def _round_down(a: int, b: int) -> int:
    return (a // b) * b


def _sublane_pack(dtype) -> int:
    """Rows per packed sublane tile: (8,128) 32-bit, (16,128) 16-bit, (32,128) 8-bit."""
    return {1: 32, 2: 16}.get(int(np.dtype(dtype).itemsize), 8)


def _vmem_capacity_bytes() -> int:
    """Generation-aware VMEM size; conservative 64 MiB (v7x per-TC) fallback."""
    try:
        cap = int(getattr(pltpu.get_tpu_info(), "vmem_capacity_bytes"))
        if cap > 0:
            return cap
    except Exception:
        pass
    return 64 * 1024 * 1024


def _block_budget_bytes(vmem_cap: int) -> int:
    # Live set of an aligned copy ~= 2 double-buffered input + 2 output blocks
    # = 4 * block_bytes, so cap one block at ~1/12 of VMEM (<= 8 MiB).
    return max(1 << 20, min(8 << 20, vmem_cap // 12))


def _vmem_limit_bytes(live_bytes: int, vmem_cap: int) -> int:
    # Request what the live set actually needs (+slack), never > 3/4 of VMEM.
    return int(min((vmem_cap * 3) // 4, max(16 << 20, live_bytes + (4 << 20))))


def _static_split_sizes(axis_len: int, num_splits: int, split) -> list:
    """Reproduce torch.split size semantics used by OnnxSplit13.forward."""
    if split is None:
        if num_splits <= 0:
            raise ValueError(f"num_splits must be positive, got {num_splits}")
        split_size = axis_len // num_splits
        if split_size <= 0:
            raise ValueError(
                f"num_splits={num_splits} is larger than axis length {axis_len}")
        sizes = [split_size] * (axis_len // split_size)
        rem = axis_len - split_size * len(sizes)
        if rem > 0:
            sizes.append(rem)
        return sizes
    if isinstance(split, (list, tuple)):
        sizes = [int(s) for s in split]
    else:
        try:
            sizes = [int(s) for s in np.asarray(split).reshape(-1).tolist()]
        except Exception as e:  # traced value under jit, etc.
            raise ValueError(
                "`split` sizes must be statically known (Python ints / numpy / "
                "concrete jax array); they determine output shapes.") from e
    if sum(sizes) != axis_len:
        raise ValueError(
            f"sum(split)={sum(sizes)} does not match axis length {axis_len}")
    return sizes


# ----------------------------------------------------------------------------
# Kernels
# ----------------------------------------------------------------------------
def _copy_block_kernel(x_ref, o_ref):
    # Pure copy: the chunk offset is handled by the input BlockSpec/DMA.
    o_ref[...] = x_ref[...]


def _make_group_slice_kernel(offsets: Sequence[int], widths: Sequence[int]):
    """Multi-output kernel for small/unaligned chunks: static lane slices."""
    def kernel(x_ref, *out_refs):
        for o_ref, off, w in zip(out_refs, offsets, widths):
            o_ref[...] = x_ref[:, off:off + w]
    return kernel


# ----------------------------------------------------------------------------
# Per-chunk copies (offset expressed at block granularity in the index_map)
# ----------------------------------------------------------------------------
def _lane_split_copy(x2, start, width, pack, budget, vmem_cap):
    """out = x2[:, start:start+width]; requires start % 128 == 0, width >= 128."""
    R, _ = x2.shape
    itemsize = int(np.dtype(x2.dtype).itemsize)

    # Lane tile: multiple of 128, divides `start`, aim for wide (>=512) stores.
    tc = min(_round_down(width, _LANE), 2048)
    if start:
        tc = math.gcd(start, tc)                      # still a multiple of 128
    # Sublane tile from the block budget (rounded to the dtype packing).
    to = max(pack, _round_down(budget // (tc * itemsize), pack))
    if to >= R:
        to = R                                        # full dim is always legal
    # Guarantee a multi-step grid for DMA pipelining / megacore sharding.
    if (pl.cdiv(R, to) * pl.cdiv(width, tc) < 2
            and R * width * itemsize > _MIN_MULTISTEP_BYTES and R >= 2 * pack):
        to = max(pack, _round_up(pl.cdiv(R, 2), pack))

    grid = (pl.cdiv(R, to), pl.cdiv(width, tc))
    start_blk = start // tc
    live = 4 * to * tc * itemsize                     # 2x dbl-buffered in + out
    return pl.pallas_call(
        _copy_block_kernel,
        out_shape=jax.ShapeDtypeStruct((R, width), x2.dtype),
        grid=grid,
        in_specs=[pl.BlockSpec((to, tc), lambda i, j: (i, start_blk + j))],
        out_specs=pl.BlockSpec((to, tc), lambda i, j: (i, j)),
        compiler_params=pltpu.CompilerParams(
            dimension_semantics=("parallel", "parallel"),
            vmem_limit_bytes=_vmem_limit_bytes(live, vmem_cap)),
    )(x2)


def _sublane_split_copy(x2, start, height, pack, budget, vmem_cap):
    """out = x2[start:start+height, :]; requires start % pack == 0, height >= pack."""
    _, C = x2.shape
    itemsize = int(np.dtype(x2.dtype).itemsize)

    # Sublane tile: multiple of the dtype packing, divides `start`.
    ts = min(_round_down(height, pack), 512)
    if start:
        ts = math.gcd(start, ts)                      # still a multiple of pack
    # Lane tile: full trailing dim if affordable, else a 128-multiple.
    tc = _round_down(budget // (ts * itemsize), _LANE)
    tc = C if tc >= C else max(_LANE, tc)
    # Guarantee a multi-step grid for DMA pipelining / megacore sharding.
    if (pl.cdiv(height, ts) * pl.cdiv(C, tc) < 2
            and height * C * itemsize > _MIN_MULTISTEP_BYTES and C >= 2 * _LANE):
        tc = max(_LANE, _round_down(pl.cdiv(C, 2), _LANE))

    grid = (pl.cdiv(height, ts), pl.cdiv(C, tc))
    start_blk = start // ts
    live = 4 * ts * tc * itemsize
    return pl.pallas_call(
        _copy_block_kernel,
        out_shape=jax.ShapeDtypeStruct((height, C), x2.dtype),
        grid=grid,
        in_specs=[pl.BlockSpec((ts, tc), lambda i, j: (start_blk + i, j))],
        out_specs=pl.BlockSpec((ts, tc), lambda i, j: (i, j)),
        compiler_params=pltpu.CompilerParams(
            dimension_semantics=("parallel", "parallel"),
            vmem_limit_bytes=_vmem_limit_bytes(live, vmem_cap)),
    )(x2)


def _grouped_slice_copy(x2, offsets, widths, pack, budget, vmem_cap):
    """One multi-output call for small / unaligned chunks: the full row stays
    resident and each chunk is a static in-kernel lane slice (read input once)."""
    R, W = x2.shape
    itemsize = int(np.dtype(x2.dtype).itemsize)
    row_bytes = (W + sum(widths)) * itemsize          # input row + all output rows

    to = max(min(pack, R), _round_down(budget // max(1, row_bytes), pack))
    if to >= R:
        to = R
    if (pl.cdiv(R, to) < 2 and R * row_bytes > _MIN_MULTISTEP_BYTES
            and R >= 2 * pack):
        to = max(pack, _round_up(pl.cdiv(R, 2), pack))

    grid = (pl.cdiv(R, to),)
    live = 2 * to * row_bytes                         # double-buffered in + outs
    return pl.pallas_call(
        _make_group_slice_kernel(offsets, widths),
        out_shape=tuple(jax.ShapeDtypeStruct((R, w), x2.dtype) for w in widths),
        grid=grid,
        in_specs=[pl.BlockSpec((to, W), lambda i: (i, 0))],
        out_specs=tuple(pl.BlockSpec((to, w), lambda i: (i, 0)) for w in widths),
        compiler_params=pltpu.CompilerParams(
            dimension_semantics=("parallel",),
            vmem_limit_bytes=_vmem_limit_bytes(live, vmem_cap)),
    )(x2)


# ----------------------------------------------------------------------------
# Public wrapper (OnnxSplit13.forward)
# ----------------------------------------------------------------------------
def onnx_split13(x: Union[jnp.ndarray, tuple],
                 num_splits: int,
                 axis: int = 0,
                 split: Optional[Union[jnp.ndarray, Sequence[int]]] = None,
                 use_pallas: Optional[bool] = None):
    """Pallas implementation of OnnxSplit13.forward. Returns a tuple of arrays.

    use_pallas: True -> force Pallas where possible, False -> XLA slices,
    None (default) -> auto (tiny tensors use fused XLA slices).
    """
    if isinstance(x, tuple):
        x = x[0]
    x = jnp.asarray(x)
    ndim = x.ndim
    axis = axis % ndim
    axis_len = int(x.shape[axis])
    sizes = _static_split_sizes(axis_len, num_splits, split)
    starts = [int(s) for s in np.cumsum([0] + sizes[:-1])]
    out_full_shapes = [x.shape[:axis] + (s,) + x.shape[axis + 1:] for s in sizes]

    itemsize = int(np.dtype(x.dtype).itemsize)
    total_bytes = int(x.size) * itemsize

    def _xla_chunk(st, sz):
        return lax.slice_in_dim(x, st, st + sz, axis=axis)

    if (use_pallas is False or x.size == 0
            or (use_pallas is None and total_bytes < _XLA_FALLBACK_BYTES)):
        # Fused XLA slices: no HBM round-trip, best for tiny activations.
        return tuple(_xla_chunk(st, sz) for st, sz in zip(starts, sizes))

    outer = int(np.prod(x.shape[:axis], dtype=np.int64)) if axis > 0 else 1
    inner = int(np.prod(x.shape[axis + 1:], dtype=np.int64)) if axis < ndim - 1 else 1
    L = axis_len
    W = L * inner
    pack = _sublane_pack(x.dtype)
    vmem_cap = _vmem_capacity_bytes()
    budget = _block_budget_bytes(vmem_cap)

    # Canonical lane-split view: rows = all leading dims, cols = (split, trailing).
    R = max(outer, 1)
    x_lane = x.reshape(R, W)
    # Sublane-split view when there are no leading dims and trailing is lane-dense.
    use_sublane_view = (outer == 1 and inner >= _LANE)
    x_sub = x.reshape(L, inner) if use_sublane_view else None

    # Per-chunk method selection.
    methods = []
    for st, sz in zip(starts, sizes):
        off, w = st * inner, sz * inner
        if sz == 0:
            methods.append("XLA")
        elif use_sublane_view and st % pack == 0 and sz >= pack:
            methods.append("A_sublane")
        elif off % _LANE == 0 and w >= _LANE:
            methods.append("A_lane")
        else:
            methods.append("B")

    # Grouped in-kernel-slice path needs the full row width resident per block.
    if min(pack, R) * W * itemsize > budget:
        # TODO(synk): very long, unaligned split axes fall back to XLA slices
        # rather than risk blowing the VMEM budget with an in-kernel slice.
        methods = ["XLA" if m == "B" else m for m in methods]

    results = [None] * len(sizes)
    b_idx = [k for k, m in enumerate(methods) if m == "B"]

    for k, (st, sz, m) in enumerate(zip(starts, sizes, methods)):
        if m == "XLA":
            results[k] = _xla_chunk(st, sz)
        elif m == "A_sublane":
            results[k] = _sublane_split_copy(
                x_sub, st, sz, pack, budget, vmem_cap).reshape(out_full_shapes[k])
        elif m == "A_lane":
            results[k] = _lane_split_copy(
                x_lane, st * inner, sz * inner, pack, budget,
                vmem_cap).reshape(out_full_shapes[k])

    if b_idx:
        outs_b = _grouped_slice_copy(
            x_lane,
            [starts[k] * inner for k in b_idx],
            [sizes[k] * inner for k in b_idx],
            pack, budget, vmem_cap)
        for k, o in zip(b_idx, outs_b):
            results[k] = o.reshape(out_full_shapes[k])

    return tuple(results)


# ----------------------------------------------------------------------------
# Self-test
# ----------------------------------------------------------------------------
if __name__ == "__main__":
    key = jax.random.PRNGKey(0)
    k1, k2 = jax.random.split(key, 2)

    # NCHW-ish activation: batch=2, channels=4, 16x16 spatial.
    x = jax.random.normal(k1, (2, 4, 16, 16), dtype=jnp.float32)

    # Case 1: split=None, num_splits=2 along the channel axis (aligned lane path).
    outs = jax.block_until_ready(
        onnx_split13(x, num_splits=2, axis=1, split=None, use_pallas=True))
    refs = jnp.split(x, 2, axis=1)
    assert len(outs) == len(refs)
    for o, r in zip(outs, refs):
        assert o.shape == r.shape and o.dtype == r.dtype
        assert bool(jnp.array_equal(o, r))

    # Case 2: explicit unequal split sizes on the LAST axis (grouped slice path).
    split_sizes = jnp.array([4, 12], dtype=jnp.int32)
    outs2 = jax.block_until_ready(
        onnx_split13(x, num_splits=2, axis=3, split=split_sizes, use_pallas=True))
    assert outs2[0].shape == (2, 4, 16, 4) and outs2[1].shape == (2, 4, 16, 12)
    assert bool(jnp.array_equal(outs2[0], x[..., :4]))
    assert bool(jnp.array_equal(outs2[1], x[..., 4:]))

    # Case 3: split along axis 0 (outer == 1, lane-dense flattened path).
    outs3 = jax.block_until_ready(
        onnx_split13(x, num_splits=2, axis=0, split=None, use_pallas=True))
    for o, r in zip(outs3, jnp.split(x, 2, axis=0)):
        assert o.shape == r.shape and bool(jnp.array_equal(o, r))

    # Case 4: interior axis -> non-zero block offset in the input index_map.
    outs4 = jax.block_until_ready(
        onnx_split13(x, num_splits=2, axis=2, split=jnp.array([8, 8]),
                     use_pallas=True))
    assert bool(jnp.array_equal(outs4[0], x[:, :, :8, :]))
    assert bool(jnp.array_equal(outs4[1], x[:, :, 8:, :]))

    # Case 5: leading-axis split with pack-aligned rows (sublane path), bf16.
    y = jax.random.normal(k2, (32, 8, 32), dtype=jnp.bfloat16)
    outs5 = jax.block_until_ready(
        onnx_split13(y, num_splits=2, axis=0, split=None, use_pallas=True))
    for o, r in zip(outs5, jnp.split(y, 2, axis=0)):
        assert o.shape == r.shape and o.dtype == r.dtype
        assert bool(jnp.array_equal(o, r))

    # Case 6: auto mode (tiny tensor -> fused XLA slice fallback).
    outs6 = jax.block_until_ready(onnx_split13(x, num_splits=2, axis=1))
    for o, r in zip(outs6, jnp.split(x, 2, axis=1)):
        assert o.shape == r.shape and bool(jnp.array_equal(o, r))

    print("KERNEL_OK")
</pallas_src>

<mosaic_0001>
module attributes {stable_mosaic.version = 11 : i64} {
  func.func @_copy_block_kernel(%arg0: i32, %arg1: i32, %arg2: memref<2x512xf32, #tpu.memory_space<vmem>>, %arg3: memref<2x512xf32, #tpu.memory_space<vmem>>) attributes {dimension_semantics = [#tpu.dimension_semantics<parallel>, #tpu.dimension_semantics<parallel>], iteration_bounds = array<i64: 1, 1>, scalar_prefetch = 0 : i64, scratch_operands = 0 : i64, tpu.core_type = #tpu.core_type<tc>, window_params = [{transform_indices = @transform_0, window_bounds = array<i64: 2, 512>}, {transform_indices = @transform_1, window_bounds = array<i64: 2, 512>}]} {
    %c0 = arith.constant 0 : index
    %c0_0 = arith.constant 0 : index
    %0 = vector.load %arg2[%c0, %c0_0] : memref<2x512xf32, #tpu.memory_space<vmem>>, vector<2x512xf32>
    %c0_1 = arith.constant 0 : index
    %c0_2 = arith.constant 0 : index
    %1 = vector.load %arg3[%c0_1, %c0_2] : memref<2x512xf32, #tpu.memory_space<vmem>>, vector<2x512xf32>
    tpu.vector_store %arg3[%c0_1, %c0_2], %0 {strides = array<i32>} : memref<2x512xf32, #tpu.memory_space<vmem>>, vector<2x512xf32>,
    return
  }
  func.func @transform_0(%arg0: i32, %arg1: i32) -> (i32, i32) {
    %c0_i32 = arith.constant 0 : i32
    %0 = arith.addi %c0_i32, %arg1 : i32
    %c0_i32_0 = arith.constant 0 : i32
    return %arg0, %0 : i32, i32
  }
  func.func @transform_1(%arg0: i32, %arg1: i32) -> (i32, i32) {
    %c0_i32 = arith.constant 0 : i32
    return %arg0, %arg1 : i32, i32
  }
}

</mosaic_0001>

<bundles_post_ra>
// kernel: tpu_custom_call.1
= control target key start
LH: loop header
LB: loop body
LE: loop exit
PB: predicated region body
PF: predicated region fallthrough
CT: control target
= control target key end

     0   :  { %6 = vsyncpa [#allocation3], 0  ;;  %s102_s0 = inlined_call_operand.hbm [shape: f32[2,1024], index: 0, kind: input, shape index: {}]   ;;  %s103_s1 = inlined_call_operand.hbm [shape: f32[2,512], index: 1, kind: output, shape index: {}]  }
   0x1   :  { %7 = vsyncpa [#allocation4], 0  ;;  %s84_s6 = smov [#allocation2]  }
   0x2   :  { %s14_s7 = sshll.u32 %s84_s6, 4  ;;  %s15_s7 = int_to_ptr.vmem [resolvable:$true] %s14_s7 }
   0x3   :  { %s48_s8 = scalar_lea.vmem %s15_s7, 128  ;;  %p53_p1 = scmp.lt.s32.totalorder %s15_s7, %s15_s7 }
   0x4   :  { %p49_p0 = scmp.ne.s32.totalorder %s15_s7, %s48_s8  ;;  %p54_p2 = scmp.lt.s32.totalorder %s48_s8, %s48_s8 }
   0x6   :  { %p55_p3 = por %p54_p2, %p53_p1 }
   0x8   :  { %p56_p4 = pnand %p55_p3, %p49_p0 }
   0xa   :  { %59 = shalt.err (!%p56_p4)
}
   0xb   :  { %17 = dma.hbm_to_vmem [thread:$0]  %s102_s0, 128, %s15_s7, [#allocation3]  }
   0xc   :  { %80 = dma.done.wait [#allocation3], 128  }
   0xd   :  { %81 = vsyncadd [#allocation3], 4294967168  ;;  %s85_s11 = smov [#allocation5]   ;;  %v21_v0 = vld [vmem:[#allocation2] sm:$0xff] }
   0xe   :  { %s29_s12 = sshll.u32 %s85_s11, 4  ;;  %22 = vst [vmem:[#allocation5] sm:$0xff] %v21_v0  ;;  %s30_s12 = int_to_ptr.vmem [resolvable:$true] %s29_s12 }
   0xf   :  { %s60_s13 = scalar_lea.vmem %s30_s12, 128  ;;  %p65_p6 = scmp.lt.s32.totalorder %s30_s12, %s30_s12 }
  0x10   :  { %p61_p5 = scmp.ne.s32.totalorder %s30_s12, %s60_s13  ;;  %p66_p7 = scmp.lt.s32.totalorder %s60_s13, %s60_s13 }
  0x12   :  { %p67_p8 = por %p66_p7, %p65_p6 }
  0x14   :  { %p68_p9 = pnand %p67_p8, %p61_p5 }
  0x16   :  { %71 = shalt.err (!%p68_p9)
}
  0x17   :  { %32 = dma.vmem_to_hbm [thread:$0]  %s30_s12, 128, %s103_s1, [#allocation4]  }
  0x18   :  { %82 = dma.done.wait [#allocation4], 128  }
  0x19   :  { %83 = vsyncadd [#allocation4], 4294967168 }
  0x1a   :  { %36 = vsyncpa [#allocation3], 1 }
  0x1b   :  { %37 = vsyncpa [#allocation4], 1 }

</bundles_post_ra>
